<compile_context>
chip_gen: v7x
topology: tpu7x:2x2x1
jax: 0.10.0
libtpu: 0.0.40
codegen_flags: <defaults>
</compile_context>

<pallas_src>
import functools
import math

import jax
import jax.numpy as jnp
from jax.experimental import pallas as pl
from jax.experimental.pallas import tpu as pltpu


_MAX_LANES = 1024                       # lane-dense tile width cap (mult. of 128)
_VMEM_LIMIT = 32 * 1024 * 1024          # scoped-VMEM budget safe on v5e/v6e/v7x
_ELEM_BLOCK_BYTES = 4 * 1024 * 1024     # ~4 MiB per elementwise operand block
_SOFTMAX_BLOCK_BYTES = 2 * 1024 * 1024  # ~2 MiB of f32 per softmax operand block


def _round_up(a, b):
    return (a + b - 1) // b * b


def _round_down(a, b):
    return a // b * b


def _pick_lanes(total):
    """Largest multiple of 128 (<= _MAX_LANES) that divides `total`, else None."""
    max_k = min(_MAX_LANES, total) // 128
    for k in range(max_k, 0, -1):
        lanes = 128 * k
        if total % lanes == 0:
            return lanes
    return None


# ----------------------------------------------------------------------------
# Elementwise activations: sigmoid / tanh  (identity never launches a kernel)
# ----------------------------------------------------------------------------
def _elementwise_kernel(x_ref, o_ref, *, name):
    # TODO(synk): on v5e (no bf16 VPU/EUP) a bf16 input would ideally be upcast
    # to f32 here; we keep the input dtype (f32 in the demo) which is also the
    # right choice on v6e/v7x (keeps the single EUP op cheap).
    x = x_ref[...]
    if name == "sigmoid":
        # sigmoid(x) = 0.5 * tanh(x/2) + 0.5 : exactly one EUP op per element.
        y = 0.5 * jnp.tanh(0.5 * x) + 0.5
    else:  # tanh
        y = jnp.tanh(x)
    o_ref[...] = y.astype(o_ref.dtype)


def _elementwise(x, name):
    if x.size == 0:
        return x
    orig_shape = x.shape
    total = int(x.size)
    itemsize = x.dtype.itemsize

    lanes = _pick_lanes(total)
    pad = 0
    if lanes is not None:
        x2 = x.reshape(total // lanes, lanes)          # free: contiguous reshape
    else:
        # No 128-multiple factorisation: pad the flat vector up to a multiple
        # of 128 lanes only (ragged row tail handled by the grid, not by pad).
        lanes = 128
        padded = _round_up(total, lanes)
        pad = padded - total
        x2 = jnp.pad(x.reshape(-1), (0, pad)).reshape(padded // lanes, lanes)

    rows = x2.shape[0]
    # ~4 MiB blocks amortise the per-grid-step overhead; double-buffered
    # in+out this stays well inside the 32 MiB scoped-VMEM budget.
    br = max(8, _round_down(_ELEM_BLOCK_BYTES // (lanes * itemsize), 8))
    lane_block = lanes
    if br >= rows:
        br = rows
        if rows >= 16:
            # Split rows so v7x's two TensorCores both get a parallel block.
            br = _round_up(-(-rows // 2), 8)
        elif lanes >= 256:
            # Too few rows to split: split the lane axis instead.
            lane_block = _round_up(-(-lanes // 2), 128)

    grid = (pl.cdiv(rows, br), pl.cdiv(lanes, lane_block))
    out = pl.pallas_call(
        functools.partial(_elementwise_kernel, name=name),
        out_shape=jax.ShapeDtypeStruct(x2.shape, x.dtype),
        grid=grid,
        in_specs=[pl.BlockSpec((br, lane_block), lambda i, j: (i, j))],
        out_specs=pl.BlockSpec((br, lane_block), lambda i, j: (i, j)),
        compiler_params=pltpu.CompilerParams(
            dimension_semantics=("parallel", "parallel"),
            vmem_limit_bytes=_VMEM_LIMIT),
    )(x2)

    out = out.reshape(-1)
    if pad:
        out = out[:total]
    return out.reshape(orig_shape)


# ----------------------------------------------------------------------------
# Softmax / LogSoftmax
# ----------------------------------------------------------------------------
def _softmax_last_kernel(x_ref, o_ref, *, log, groups):
    # block: (br, groups*d); softmax over each length-d lane segment.
    # groups == 1 is the plain "reduce over the last axis" case.
    x = x_ref[...].astype(jnp.float32)
    d = x.shape[-1] // groups
    for j in range(groups):
        sl = slice(j * d, (j + 1) * d)
        seg = x[:, sl]
        m = jnp.max(seg, axis=-1, keepdims=True)
        sm = seg - m
        e = jnp.exp(sm)
        s = jnp.sum(e, axis=-1, keepdims=True)
        y = (sm - jnp.log(s)) if log else (e / s)       # exact divide
        o_ref[:, sl] = y.astype(o_ref.dtype)


def _softmax_mid_kernel(x_ref, o_ref, *, log):
    # block: (bp, C, tl); reduce over the channel/sublane axis (XLU), lane
    # axis stays dense -> unmasked stores.
    x = x_ref[...].astype(jnp.float32)
    m = jnp.max(x, axis=1, keepdims=True)
    xm = x - m
    e = jnp.exp(xm)
    s = jnp.sum(e, axis=1, keepdims=True)
    y = (xm - jnp.log(s)) if log else (e / s)           # exact divide
    o_ref[...] = y.astype(o_ref.dtype)


def _softmax_last(x2, log):
    rows0, d0 = x2.shape
    rows, d, groups = rows0, d0, 1
    # Lane-dense small-d path: fold g = 128//d rows into one 128-lane row so
    # loads/stores are full-lane instead of masked 16-of-128-lane accesses.
    if 8 <= d0 < 128 and 128 % d0 == 0 and rows0 % (128 // d0) == 0:
        groups = 128 // d0
        rows = rows0 // groups
        d = 128
        x2 = x2.reshape(rows, d)                         # free: contiguous

    # Row blocks grow with the f32 budget (no artificial 512-row cap).
    br = max(8, _round_down(_SOFTMAX_BLOCK_BYTES // (d * 4), 8))
    if br >= rows:
        br = rows
        if rows >= 16:
            br = _round_up(-(-rows // 2), 8)             # 2 blocks for v7x's 2 TCs

    out = pl.pallas_call(
        functools.partial(_softmax_last_kernel, log=log, groups=groups),
        out_shape=jax.ShapeDtypeStruct((rows, d), x2.dtype),
        grid=(pl.cdiv(rows, br),),
        in_specs=[pl.BlockSpec((br, d), lambda i: (i, 0))],
        out_specs=pl.BlockSpec((br, d), lambda i: (i, 0)),
        compiler_params=pltpu.CompilerParams(
            dimension_semantics=("parallel",),
            vmem_limit_bytes=_VMEM_LIMIT),
    )(x2)

    if groups > 1:
        out = out.reshape(rows0, d0)
    return out


def _softmax_mid(x3, log):
    pre, c, post = x3.shape
    # Lane tiling: full `post` extent if it fits the budget, else 128-multiples.
    lane_budget = max(128, _round_down(_SOFTMAX_BLOCK_BYTES // (c * 4), 128))
    if post <= lane_budget:
        tl, lane_grid = post, 1
    else:
        tl, lane_grid = lane_budget, pl.cdiv(post, lane_budget)

    # Block the `pre` axis so each grid step moves a decent amount of data.
    bp = max(1, _SOFTMAX_BLOCK_BYTES // (c * tl * 4))
    bp = min(bp, pre)
    if bp >= pre and lane_grid == 1 and pre >= 2:
        bp = -(-pre // 2)                                # 2 blocks for v7x's 2 TCs
    pre_grid = pl.cdiv(pre, bp)

    # TODO(synk): for very large C (c*tl*4B >> 4 MiB) add a channel-chunked
    # two-pass fallback instead of loading the full channel extent per block.
    return pl.pallas_call(
        functools.partial(_softmax_mid_kernel, log=log),
        out_shape=jax.ShapeDtypeStruct((pre, c, post), x3.dtype),
        grid=(pre_grid, lane_grid),
        in_specs=[pl.BlockSpec((bp, c, tl), lambda i, j: (i, 0, j))],
        out_specs=pl.BlockSpec((bp, c, tl), lambda i, j: (i, 0, j)),
        compiler_params=pltpu.CompilerParams(
            dimension_semantics=("parallel", "parallel"),
            vmem_limit_bytes=_VMEM_LIMIT),
    )(x3)


def _softmax(x, dim, log=False):
    nd = x.ndim
    if nd == 0:
        return jnp.zeros_like(x) if log else jnp.ones_like(x)
    if dim is None:
        # torch legacy default: dim=0 for 0/1/3-D inputs, else dim=1
        dim = 0 if nd in (0, 1, 3) else 1
    dim = dim % nd
    shape = x.shape
    pre = math.prod(shape[:dim])
    c = shape[dim]
    post = math.prod(shape[dim + 1:])

    if post == 1:
        out = _softmax_last(x.reshape(pre, c), log)      # reduction axis is last
    else:
        out = _softmax_mid(x.reshape(pre, c, post), log) # reduce over sublane axis
    return out.reshape(shape)


# ----------------------------------------------------------------------------
# Activation module (mirrors hybridnets Activation.forward)
# ----------------------------------------------------------------------------
class Activation:
    def __init__(self, name, **params):
        self._name = name
        self._params = params
        if name is None or name == "identity":
            self._fn = lambda x: x                       # no-op: no kernel launch
        elif name == "sigmoid":
            self._fn = lambda x: _elementwise(x, "sigmoid")
        elif name == "tanh":
            self._fn = lambda x: _elementwise(x, "tanh")
        elif name == "softmax2d":
            self._fn = lambda x: _softmax(x, 1, log=False)
        elif name == "softmax":
            dim = params.get("dim", None)
            self._fn = lambda x: _softmax(x, dim, log=False)
        elif name == "logsoftmax":
            dim = params.get("dim", None)
            self._fn = lambda x: _softmax(x, dim, log=True)
        elif callable(name):
            # TODO(synk): arbitrary callable activations are not translated to Pallas
            self._fn = name(**params)
        else:
            raise ValueError(
                "Activation should be callable/sigmoid/softmax/logsoftmax/"
                "tanh/None; got {}".format(name)
            )

    def __call__(self, x):
        return self._fn(x)


if __name__ == "__main__":
    key = jax.random.PRNGKey(0)
    x = jax.random.normal(key, (2, 4, 16, 16), dtype=jnp.float32)

    refs = {
        "identity": lambda v: v,
        "sigmoid": jax.nn.sigmoid,
        "tanh": jnp.tanh,
        "softmax2d": lambda v: jax.nn.softmax(v, axis=1),
        "softmax_dim1": lambda v: jax.nn.softmax(v, axis=1),
        "softmax_last": lambda v: jax.nn.softmax(v, axis=-1),
        "logsoftmax_dim1": lambda v: jax.nn.log_softmax(v, axis=1),
    }

    configs = [
        ("identity", "identity", {}, 0.0),
        ("sigmoid", "sigmoid", {}, 1e-5),
        ("tanh", "tanh", {}, 1e-5),
        ("softmax2d", "softmax2d", {}, 1e-5),
        ("softmax_dim1", "softmax", {"dim": 1}, 1e-5),
        ("softmax_last", "softmax", {"dim": -1}, 1e-5),
        ("logsoftmax_dim1", "logsoftmax", {"dim": 1}, 1e-5),
    ]

    for tag, name, params, tol in configs:
        act = Activation(name, **params)
        y = jax.block_until_ready(act(x))
        y_ref = refs[tag](x)
        assert y.shape == x.shape, tag
        err = float(jnp.max(jnp.abs(y - y_ref)))
        assert err <= tol, f"mismatch for {tag}: err={err}"

    print("KERNEL_OK")
</pallas_src>

<mosaic_0001>
module attributes {stable_mosaic.version = 11 : i64} {
  func.func @_elementwise_kernel(%arg0: i32, %arg1: i32, %arg2: memref<2x512xf32, #tpu.memory_space<vmem>>, %arg3: memref<2x512xf32, #tpu.memory_space<vmem>>) attributes {dimension_semantics = [#tpu.dimension_semantics<parallel>, #tpu.dimension_semantics<parallel>], iteration_bounds = array<i64: 1, 2>, scalar_prefetch = 0 : i64, scratch_operands = 0 : i64, tpu.core_type = #tpu.core_type<tc>, window_params = [{transform_indices = @transform_0, window_bounds = array<i64: 2, 512>}, {transform_indices = @transform_1, window_bounds = array<i64: 2, 512>}]} {
    %c0 = arith.constant 0 : index
    %c0_0 = arith.constant 0 : index
    %0 = vector.load %arg2[%c0, %c0_0] : memref<2x512xf32, #tpu.memory_space<vmem>>, vector<2x512xf32>
    %cst = arith.constant 5.000000e-01 : f32
    %1 = vector.broadcast %cst : f32 to vector<2x512xf32>
    %2 = arith.mulf %1, %0 : vector<2x512xf32>
    %3 = math.tanh %2 : vector<2x512xf32>
    %cst_1 = arith.constant 5.000000e-01 : f32
    %4 = vector.broadcast %cst_1 : f32 to vector<2x512xf32>
    %5 = arith.mulf %4, %3 : vector<2x512xf32>
    %cst_2 = arith.constant 5.000000e-01 : f32
    %6 = vector.broadcast %cst_2 : f32 to vector<2x512xf32>
    %7 = arith.addf %5, %6 : vector<2x512xf32>
    %c0_3 = arith.constant 0 : index
    %c0_4 = arith.constant 0 : index
    %8 = vector.load %arg3[%c0_3, %c0_4] : memref<2x512xf32, #tpu.memory_space<vmem>>, vector<2x512xf32>
    tpu.vector_store %arg3[%c0_3, %c0_4], %7 {strides = array<i32>} : memref<2x512xf32, #tpu.memory_space<vmem>>, vector<2x512xf32>,
    return
  }
  func.func @transform_0(%arg0: i32, %arg1: i32) -> (i32, i32) {
    %c0_i32 = arith.constant 0 : i32
    return %arg0, %arg1 : i32, i32
  }
  func.func @transform_1(%arg0: i32, %arg1: i32) -> (i32, i32) {
    %c0_i32 = arith.constant 0 : i32
    return %arg0, %arg1 : i32, i32
  }
}

</mosaic_0001>

<bundles_post_ra>
// kernel: tpu_custom_call.1
= control target key start
LH: loop header
LB: loop body
LE: loop exit
PB: predicated region body
PF: predicated region fallthrough
CT: control target
= control target key end

     0   :  { %6 = vsyncpa [#allocation3], 0  ;;  %s639_s0 = inlined_call_operand.hbm [shape: f32[2,1024], index: 0, kind: input, shape index: {}]   ;;  %s640_s1 = inlined_call_operand.hbm [shape: f32[2,1024], index: 1, kind: output, shape index: {}]  }
   0x1   :  { %8 = vsyncpa [#allocation3 + $0x1], 0 }
   0x2   :  { %9 = vsyncpa [#allocation4], 0 }
   0x3   :  { %11 = vsyncpa [#allocation4 + $0x1], 0  ;;  %s467_s6 = smov 0   ;;  %s469_s7 = smov 0  }
   0x4   :  { %s471_s8 = smov 0   ;;  %s473_s9 = smov 0  }
   0x5   :  { %s475_s10 = smov 0   ;;  %s477_s11 = smov 0  }
   0x6 LB: > { %s260_s12 = sadd.s32 4294967295, %s453_s11   ;;  %s261_s13 = sadd.s32 4294967294, %s453_s11   ;;  %s453_s11 = sphi %s477_s11, %s17_s11   ;;  %s449_s10 = sphi %s475_s10, %s656_s10   ;;  %s445_s9 = sphi %s473_s9, %s655_s9   ;;  %s441_s8 = sphi %s471_s8, %s654_s8   ;;  %s437_s7 = sphi %s469_s7, %s653_s7   ;;  %s433_s6 = sphi %s467_s6, %s652_s6  }
   0x7   : > { %s26_s14 = sadd.s32 1, %s449_s10  ;;  %s38_s15 = sadd.s32 1, %s441_s8 }
   0x8   : > { %p27_p0 = scmp.ge.s32.totalorder %s26_s14, 2  ;;  %p45_p1 = scmp.ne.s32.totalorder %s441_s8, %s437_s7 }
   0x9   : > { %p46_p2 = scmp.eq.s32.totalorder %s453_s11, 0  ;;  %p51_p3 = scmp.ne.s32.totalorder %s437_s7, %s433_s6 }
   0xa   : > { %s658_s14 = smov (%p27_p0, %s26_s14), 0  ;;  %p52_p5 = scmp.eq.s32.totalorder %s260_s12, 0 }
   0xb   : > { %p508_p4 = por %p46_p2, %p45_p1  ;;  %s34_s17 = ssub.s32 %s449_s10, %s658_s14 }
   0xc   : > { %p77_p6 = scmp.eq.s32.totalorder %s260_s12, 1  ;;  %p36_p7 = scmp.eq.s32.totalorder %s34_s17, 0 }
   0xd   : > { %p514_p8 = por %p52_p5, %p51_p3  ;;  %p83_p10 = scmp.eq.s32.totalorder %s261_s13, 1 }
   0xe   : > { %p518_p9 = por %p77_p6, %p45_p1  ;;  %p289_p13 = scmp.lt.s32.totalorder %s453_s11, 2 }
   0xf   : > { %s523_s20 = scalar_select %p36_p7, %s441_s8, %s38_s15  }
  0x10   : > { %s644_s19 = scalar_select %p518_p9, 1, 0 }
  0x11   : > { %p525_p11 = por %p83_p10, %p51_p3  ;;  %s103_s22 = sand.u32 1, %s441_s8  }
  0x12   : > { %s264_s23 = sshll.u32 %s103_s22, 3  ;;  %s275_s24 = sshll.u32 %s449_s10, 7 }
  0x13   : > { %s645_s21 = scalar_select %p525_p11, 1, 0 }
  0x14   : > { %s536_s27 = scalar_lea.hbm %s639_s0, %s275_s24  ;;  %s107_s28 = scalar_lea.vmem [#allocation2], %s264_s23 }
  0x15   : > { %s117_s29 = sshll.u32 %s107_s28, 4  ;;  %p542_p0 = pnand %p289_p13, %p508_p4  ;;  %s538_s29 = int_to_ptr.vmem [resolvable:$true] %s117_s29 }
  0x16   : > { %s104_s2 = scalar_lea.sflag [#allocation3], %s103_s22  ;;  %s341_s3 = scalar_lea.hbm %s536_s27, 128 }
  0x17   : > { %p342_p3 = scmp.ne.s32.totalorder %s536_s27, %s341_s3  ;;  %p343_p5 = pneg %p542_p0 }
  0x18   : > { %s346_s12 = scalar_lea.hbm %s639_s0, 256  ;;  %p347_p4 = scmp.lt.u32.totalorder %s536_s27, %s639_s0 }
  0x19   : > { %p344_p6 = pnand %p343_p5, %p342_p3  ;;  %p348_p10 = scmp.lt.u32.totalorder %s346_s12, %s341_s3 }
  0x1a   : > { %p350_p12 = scmp.lt.u32.totalorder %s341_s3, %s536_s27 }
  0x1b   : > { %p345_p7 = pneg %p344_p6  ;;  %p349_p13 = por %p348_p10, %p347_p4 }
  0x1d   : > { %p351_p1 = por %p350_p12, %p349_p13 }
  0x1f   : > { %p352_p2 = pnand %p351_p1, %p345_p7 }
  0x21   : > { %355 = shalt.err (!%p352_p2)
}
  0x22   : > { %s356_s16 = scalar_lea.vmem %s538_s29, 128  ;;  %s455_s17 = smov [#allocation2]  }
  0x23   : > { %p357_p3 = scmp.ne.s32.totalorder %s538_s29, %s356_s16  ;;  %s361_s22 = sshll.u32 %s455_s17, 4  ;;  %s362_s22 = int_to_ptr.vmem [resolvable:$false] %s361_s22 }
  0x24   : > { %s363_s23 = scalar_lea.vmem %s362_s22, 256  ;;  %p364_p9 = scmp.lt.s32.totalorder %s538_s29, %s362_s22 }
  0x25   : > { %p359_p6 = pnand %p357_p3, %p343_p5  ;;  %p365_p4 = scmp.lt.s32.totalorder %s363_s23, %s356_s16 }
  0x27   : > { %p360_p11 = pneg %p359_p6  ;;  %p366_p10 = por %p365_p4, %p364_p9 }
  0x29   : > { %p367_p12 = pnand %p366_p10, %p360_p11 }
  0x2b   : > { %370 = shalt.err (!%p367_p12)
}
  0x2c   : > { %284 = dma.hbm_to_vmem [thread:$0]  (!%p542_p0), %s536_s27, 128, %s538_s29, %s104_s2  }
  0x2d   : > { %p647_p1 = scmp.lt.s32.totalorder %s453_s11, 3  ;;  %p648_p2 = scmp.ge.s32.totalorder %s453_s11, 1 }
  0x2f   : > { %p123_p5 = pnand %p648_p2, %p647_p1 }
  0x30   : > { %s578_s24 = sand.u32 (!%p123_p5), 1, %s437_s7  }
  0x31   : > { %126 = sbr.rel (%p123_p5) target bundleno = 89 (0x59), region = 24  ;;  %s268_s25 = sshll.u32 (!%p123_p5), %s578_s24, 3 }
  0x32   : > { %s129_s26 = scalar_lea.sflag (!%p123_p5), [#allocation3], %s578_s24  ;;  %s132_s28 = scalar_lea.vmem (!%p123_p5), [#allocation2], %s268_s25 }
  0x38   : > { %424 = dma.done.wait (%p514_p8), %s129_s26, 128  }
  0x39   : > { %426 = vsyncadd (%p514_p8), %s129_s26, 4294967168  ;;  %v153_v0 = vld [vmem:[%s132_s28] sm:$0xff]  ;;  %s150_s27 = scalar_lea.vmem [#allocation5], %s268_s25  ;;  %s276_s30 = sshll.u32 %s445_s9, 7 }
  0x3a   : > { %v154_v1 = vmul.f32 0.5, %v153_v0  ;;  %s176_s29 = sshll.u32 %s150_s27, 4  ;;  %s592_s18 = scalar_lea.hbm %s640_s1, %s276_s30  ;;  %s587_s29 = int_to_ptr.vmem [resolvable:$true] %s176_s29 }
  0x3b   : > { %s160_s4 = scalar_lea.sflag [#allocation4], %s578_s24  ;;  %s371_s5 = scalar_lea.vmem %s587_s29, 128 }
  0x3c   : > { %339 = vtanh.f32 %v154_v1  ;;  %p372_p8 = scmp.ne.s32.totalorder %s587_s29, %s371_s5  ;;  %p649_p9 = scmp.ne.s32.totalorder %s644_s19, 0 }
  0x3d   : > { %s456_s9 = smov [#allocation5]  }
  0x3e   : > { %p373_p11 = pnand %p372_p8, %p649_p9  ;;  %s375_s12 = sshll.u32 %s456_s9, 4  ;;  %s376_s12 = int_to_ptr.vmem [resolvable:$false] %s375_s12 }
  0x3f   : > { %s377_s13 = scalar_lea.vmem %s376_s12, 256  ;;  %p378_p7 = scmp.lt.s32.totalorder %s587_s29, %s376_s12 }
  0x40   : > { %p374_p0 = pneg %p373_p11  ;;  %p379_p13 = scmp.lt.s32.totalorder %s377_s13, %s371_s5 }
  0x42   : > { %p380_p3 = por %p379_p13, %p378_p7 }
  0x44   : > { %p381_p6 = pnand %p380_p3, %p374_p0 }
  0x46   : > { %v340_v2 = vpop.eup %339 }
  0x47   : > { %v156_v3 = vmul.f32 0.5, %v340_v2 }
  0x49   : > { %v157_v4 = vadd.f32 0.5, %v156_v3 }
  0x4b   : > { %158 = vst [vmem:[%s150_s27] sm:$0xff] %v157_v4 }
  0x4c   : > { %384 = shalt.err (!%p381_p6)
}
  0x4d   : > { %s385_s15 = scalar_lea.hbm %s592_s18, 128  ;;  %s389_s22 = scalar_lea.hbm %s640_s1, 256 }
  0x4e   : > { %p386_p4 = scmp.ne.s32.totalorder %s592_s18, %s385_s15  ;;  %p390_p1 = scmp.lt.u32.totalorder %s592_s18, %s640_s1 }
  0x4f   : > { %p391_p2 = scmp.lt.u32.totalorder %s389_s22, %s385_s15  ;;  %p393_p8 = scmp.lt.u32.totalorder %s385_s15, %s592_s18 }
  0x50   : > { %p387_p10 = pnand %p386_p4, %p649_p9 }
  0x51   : > { %p392_p5 = por %p391_p2, %p390_p1 }
  0x52   : > { %p388_p12 = pneg %p387_p10 }
  0x53   : > { %p394_p11 = por %p393_p8, %p392_p5 }
  0x55   : > { %p395_p0 = pnand %p394_p11, %p388_p12 }
  0x57   : > { %398 = shalt.err (!%p395_p0)
}
  0x58   : > { %279 = dma.vmem_to_hbm [thread:$0]  (%p649_p9), %s587_s29, 128, %s592_s18, %s160_s4  }
  0x59 PF: > { %s188_s25 = sand.u32 1, %s433_s6   ;;  %p650_p7 = scmp.ne.s32.totalorder %s645_s21, 0 }
  0x5a   : > { %p651_p13 = scmp.ge.s32.totalorder %s453_s11, 2  ;;  %s189_s26 = scalar_lea.sflag [#allocation4], %s188_s25 }
  0x5c   : > { %p286_p3 = pnand %p651_p13, %p650_p7 }
  0x5e   : > { %428 = dma.done.wait (!%p286_p3), %s189_s26, 128  }
  0x5f   : > { %430 = vsyncadd (!%p286_p3), %s189_s26, 4294967168  ;;  %s17_s11 = sadd.s32 1, %s453_s11   ;;  %s652_s6 = smov %s437_s7 }
  0x60   : > { %p14_p6 = scmp.ge.s32.totalorder %s17_s11, 4   ;;  %s653_s7 = smov %s441_s8 }
  0x61   : > { %s654_s8 = smov %s523_s20  ;;  %s655_s9 = smov %s449_s10 }
  0x62   : > { %s656_s10 = smov %s658_s14  ;;  %16 = sbr.rel (!%p14_p6) target bundleno = 6 (0x6), region = 69 }
  0x69   :  { %194 = vsyncpa [#allocation3], 1 }
  0x6a   :  { %196 = vsyncpa [#allocation3 + $0x1], 1 }
  0x6b   :  { %197 = vsyncpa [#allocation4], 1 }
  0x6c   :  { %199 = vsyncpa [#allocation4 + $0x1], 1 }

</bundles_post_ra>
